<compile_context>
chip_gen: v7x
topology: tpu7x:2x2x1
jax: 0.10.0
libtpu: 0.0.40
codegen_flags: <defaults>
</compile_context>

<pallas_src>
import functools

import jax
import jax.numpy as jnp
from jax import lax
from jax.experimental import pallas as pl
from jax.experimental.pallas import tpu as pltpu


def _round_up(x, m):
    return ((x + m - 1) // m) * m


def _convnorm_kernel(w_ref, b_ref, g_ref, be_ref, x_ref, o_ref, rhs_ref, *,
                     stride, m_max, n_in_p, n_out, t_out):
    """One batch element per grid step.

    w_ref   : (nOut_p, C_p)            flattened taps, C_p = stride*m_max*nIn_p
    b_ref   : (nOut_p, 1)              conv bias    (f32)
    g_ref   : (nOut_p, 1)              GlobLN gamma (f32)
    be_ref  : (nOut_p, 1)              GlobLN beta  (f32)
    x_ref   : (stride, nIn_p, T_slab)  zero-padded, residue-decimated input
    o_ref   : (1, nOut_p, T_out_p)     lane-dense output block (f32)
    rhs_ref : (C_p, T_out_p)           VMEM scratch: deep-contraction RHS
    """
    t_out_p = o_ref.shape[2]

    # ---- Assemble the deep-contraction RHS (static lane shifts -> XLU/ldst,
    #      overlapped with the MXU work by the scheduler) ----
    for r in range(stride):
        x_r = x_ref[r]                                   # (nIn_p, T_slab)
        for m in range(m_max):
            row0 = (r * m_max + m) * n_in_p
            rhs_ref[pl.ds(row0, n_in_p), :] = x_r[:, m:m + t_out_p]

    # ---- Conv1d: a single deep matmul on the MXU, f32 accumulation ----
    acc = jnp.dot(w_ref[...], rhs_ref[...],
                  preferred_element_type=jnp.float32)    # (nOut_p, T_out_p)
    y = acc + b_ref[...]                                 # bias, bcast over time

    # ---- Global LayerNorm over (channel, time) ----
    # Padded channel rows of y are exactly zero (weights & bias zero-padded),
    # so channel-axis reductions need no row mask; only padded time columns
    # (which carry the bias) must be masked -> O(T) column mask.
    n = float(n_out * t_out)
    col_mask = (lax.broadcasted_iota(jnp.int32, (1, t_out_p), 1)
                < t_out).astype(jnp.float32)
    s1 = jnp.sum(jnp.sum(y, axis=0, keepdims=True) * col_mask)
    mean = s1 / n
    # Centered (cancellation-safe) variance; each padded channel row adds
    # exactly mean^2 per column, removed with a scalar correction.
    d = y - mean
    pad_rows = float(y.shape[0] - n_out)
    s2_col = jnp.sum(d * d, axis=0, keepdims=True) - pad_rows * (mean * mean)
    var = jnp.maximum(jnp.sum(s2_col * col_mask) / n, 0.0)
    inv = lax.rsqrt(var + 1e-8)                          # EUP slot

    # Fold normalization + gamma/beta into one per-channel affine.
    scale = g_ref[...] * inv                             # (nOut_p, 1)
    shift = be_ref[...] - scale * mean
    o_ref[0] = (y * scale + shift).astype(o_ref.dtype)


def conv_norm(x, weight, bias, gamma, beta, *, stride=1,
              matmul_dtype=jnp.bfloat16):
    """x: (B, nIn, T); weight: (nOut, nIn, K); bias/gamma/beta: (nOut,)."""
    B, nIn, T = x.shape
    nOut, nIn_w, K = weight.shape
    assert nIn_w == nIn, "grouped conv not supported (groups=1 only)"

    pad = (K - 1) // 2
    T_out = (T + 2 * pad - K) // stride + 1

    itemsize = jnp.dtype(matmul_dtype).itemsize
    sub = 16 if itemsize == 2 else 8                     # packed-sublane multiple
    nIn_p = _round_up(nIn, sub)
    nOut_p = _round_up(nOut, sub)
    T_out_p = _round_up(T_out, 128)                      # lane-dense output
    m_max = -(-K // stride)                              # taps per residue (ceil)
    T_slab = _round_up(T_out_p + m_max - 1, 128)         # lane-dense input slab
    I_len = T_slab * stride                              # padded input length
    C_p = stride * m_max * nIn_p                         # deep contraction dim

    # Zero-pad channels (to nIn_p) and time (conv left pad + right pad to slab).
    x_c = x.astype(matmul_dtype)
    right = I_len - pad - T
    if right < 0:   # stride >> pad: trailing samples are never used, drop them
        x_c, right = x_c[:, :, :T + right], 0
    x_p = jnp.pad(x_c, ((0, 0), (0, nIn_p - nIn), (pad, right)))

    if stride == 1:
        x_slabs = x_p                                    # (B, nIn_p, T_slab)
    else:
        # Residue (polyphase) decimation: slabs[b,r,c,j] = x_p[b,c,j*stride+r]
        x_slabs = x_p.reshape(B, nIn_p, T_slab, stride).transpose(0, 3, 1, 2)
        x_slabs = x_slabs.reshape(B * stride, nIn_p, T_slab)

    # Flatten conv taps to one (nOut_p, C_p) matrix grouped by (residue, shift):
    # columns [(r*m_max+m)*nIn_p : ...+nIn] hold W[:, :, r + stride*m].
    w_mat = jnp.zeros((nOut_p, C_p), jnp.float32)
    for r in range(stride):
        for m in range(m_max):
            k = r + stride * m
            if k < K:
                c0 = (r * m_max + m) * nIn_p
                w_mat = w_mat.at[:nOut, c0:c0 + nIn].set(
                    weight[:, :, k].astype(jnp.float32))
    w_mat = w_mat.astype(matmul_dtype)

    def _pad_vec(v):
        return jnp.zeros((nOut_p, 1), jnp.float32).at[:nOut, 0].set(
            v.astype(jnp.float32))

    b2d, g2d, be2d = _pad_vec(bias), _pad_vec(gamma), _pad_vec(beta)

    kernel = functools.partial(_convnorm_kernel, stride=stride, m_max=m_max,
                               n_in_p=nIn_p, n_out=nOut, t_out=T_out)

    # VMEM budget: double-buffered operands + output, RHS scratch, plus a few
    # f32 temporaries the size of the output tile (y, d, d*d, epilogue).
    est = (2 * (stride * nIn_p * T_slab * itemsize        # x slab
                + nOut_p * C_p * itemsize                 # weights
                + 3 * nOut_p * 4                          # bias/gamma/beta
                + nOut_p * T_out_p * 4)                   # output
           + C_p * T_out_p * itemsize                     # RHS scratch
           + 6 * nOut_p * T_out_p * 4)                    # in-kernel temps
    vmem_limit = min(128 * 1024 * 1024,
                     max(32 * 1024 * 1024, int(est * 1.3)))

    out = pl.pallas_call(
        kernel,
        out_shape=jax.ShapeDtypeStruct((B, nOut_p, T_out_p), jnp.float32),
        grid_spec=pltpu.PrefetchScalarGridSpec(
            num_scalar_prefetch=0,
            grid=(B,),
            in_specs=[
                pl.BlockSpec((nOut_p, C_p), lambda b: (0, 0)),
                pl.BlockSpec((nOut_p, 1), lambda b: (0, 0)),
                pl.BlockSpec((nOut_p, 1), lambda b: (0, 0)),
                pl.BlockSpec((nOut_p, 1), lambda b: (0, 0)),
                # Block index b over a first dim of size B*stride with block
                # extent `stride` selects exactly batch b's residue slabs.
                pl.BlockSpec((stride, nIn_p, T_slab), lambda b: (b, 0, 0)),
            ],
            out_specs=pl.BlockSpec((1, nOut_p, T_out_p), lambda b: (b, 0, 0)),
            scratch_shapes=[pltpu.VMEM((C_p, T_out_p), matmul_dtype)],
        ),
        compiler_params=pltpu.CompilerParams(
            dimension_semantics=("parallel",),
            vmem_limit_bytes=vmem_limit),
    )(w_mat, b2d, g2d, be2d, x_slabs)

    return out[:, :nOut, :T_out]


def _reference(x, weight, bias, gamma, beta, *, stride=1):
    """Pure-JAX reference (conv1d NCW + GlobLN) for verification."""
    K = weight.shape[-1]
    pad = (K - 1) // 2
    y = lax.conv_general_dilated(
        x, weight, window_strides=(stride,), padding=[(pad, pad)],
        dimension_numbers=("NCH", "OIH", "NCH"))
    y = y + bias[None, :, None]
    mean = jnp.mean(y, axis=(1, 2), keepdims=True)
    var = jnp.mean((y - mean) ** 2, axis=(1, 2), keepdims=True)
    normed = (y - mean) / jnp.sqrt(var + 1e-8)
    return gamma[None, :, None] * normed + beta[None, :, None]


if __name__ == "__main__":
    def _run_case(key, B, nIn, nOut, K, T, stride, matmul_dtype, atol, rtol):
        kx, kw, kb = jax.random.split(key, 3)
        x = jax.random.normal(kx, (B, nIn, T), dtype=jnp.float32)
        fan_in = nIn * K
        bound = 1.0 / (fan_in ** 0.5)
        weight = jax.random.uniform(kw, (nOut, nIn, K), jnp.float32,
                                    -bound, bound)
        bias = jax.random.uniform(kb, (nOut,), jnp.float32, -bound, bound)
        gamma = jnp.ones((nOut,), jnp.float32)   # GlobLN gamma init = ones
        beta = jnp.zeros((nOut,), jnp.float32)   # GlobLN beta init = zeros

        out = jax.block_until_ready(
            conv_norm(x, weight, bias, gamma, beta, stride=stride,
                      matmul_dtype=matmul_dtype))
        ref = _reference(x, weight, bias, gamma, beta, stride=stride)
        assert out.shape == ref.shape, f"bad shape {out.shape} vs {ref.shape}"
        err = float(jnp.max(jnp.abs(out - ref)))
        assert jnp.allclose(out, ref, atol=atol, rtol=rtol), (
            f"mismatch vs reference (max abs err {err})")

    key = jax.random.PRNGKey(0)
    k1, k2, k3 = jax.random.split(key, 3)
    # Module config ConvNorm(nIn=4, nOut=6, kSize=3, stride=1): exact f32 path.
    _run_case(k1, 2, 4, 6, 3, 16, 1, jnp.float32, 2e-5, 2e-5)
    # Same config on the default bf16 MXU fast path (looser tolerance).
    _run_case(k2, 2, 4, 6, 3, 16, 1, jnp.bfloat16, 5e-2, 5e-2)
    # Strided config exercises the polyphase decomposition (f32 path).
    _run_case(k3, 2, 5, 7, 5, 19, 2, jnp.float32, 2e-5, 2e-5)

    print("KERNEL_OK")
</pallas_src>

<mosaic_0001>
module attributes {stable_mosaic.version = 11 : i64} {
  func.func @_convnorm_kernel(%arg0: i32, %arg1: memref<8x24xf32, #tpu.memory_space<vmem>>, %arg2: memref<8x1xf32, #tpu.memory_space<vmem>>, %arg3: memref<8x1xf32, #tpu.memory_space<vmem>>, %arg4: memref<8x1xf32, #tpu.memory_space<vmem>>, %arg5: memref<1x8x256xf32, #tpu.memory_space<vmem>>, %arg6: memref<1x8x128xf32, #tpu.memory_space<vmem>>, %arg7: memref<24x128xf32, #tpu.memory_space<vmem>>) attributes {dimension_semantics = [#tpu.dimension_semantics<parallel>], iteration_bounds = array<i64: 2>, scalar_prefetch = 0 : i64, scratch_operands = 1 : i64, tpu.core_type = #tpu.core_type<tc>, window_params = [{pipeline_mode = #tpu.pipeline_mode<synchronous>, transform_indices = @transform_0, window_bounds = array<i64: 8, 24>}, {pipeline_mode = #tpu.pipeline_mode<synchronous>, transform_indices = @transform_1, window_bounds = array<i64: 8, 1>}, {pipeline_mode = #tpu.pipeline_mode<synchronous>, transform_indices = @transform_2, window_bounds = array<i64: 8, 1>}, {pipeline_mode = #tpu.pipeline_mode<synchronous>, transform_indices = @transform_3, window_bounds = array<i64: 8, 1>}, {transform_indices = @transform_4, window_bounds = array<i64: 1, 8, 256>}, {transform_indices = @transform_5, window_bounds = array<i64: 1, 8, 128>}]} {
    %c0 = arith.constant 0 : index
    %c0_0 = arith.constant 0 : index
    %c0_1 = arith.constant 0 : index
    %0 = vector.load %arg5[%c0, %c0_0, %c0_1] : memref<1x8x256xf32, #tpu.memory_space<vmem>>, vector<1x8x256xf32>
    %1 = vector.shape_cast %0 : vector<1x8x256xf32> to vector<8x256xf32>
    %2 = vector.extract_strided_slice %1 {offsets = [0, 0], sizes = [8, 128], strides = [1, 1]} : vector<8x256xf32> to vector<8x128xf32>
    %c0_2 = arith.constant 0 : index
    %c0_3 = arith.constant 0 : index
    %3 = vector.load %arg7[%c0_2, %c0_3] : memref<24x128xf32, #tpu.memory_space<vmem>>, vector<8x128xf32>
    tpu.vector_store %arg7[%c0_2, %c0_3], %2 {strides = array<i32>} : memref<24x128xf32, #tpu.memory_space<vmem>>, vector<8x128xf32>,
    %4 = vector.extract_strided_slice %1 {offsets = [0, 1], sizes = [8, 128], strides = [1, 1]} : vector<8x256xf32> to vector<8x128xf32>
    %c8 = arith.constant 8 : index
    %c0_4 = arith.constant 0 : index
    %5 = vector.load %arg7[%c8, %c0_4] : memref<24x128xf32, #tpu.memory_space<vmem>>, vector<8x128xf32>
    tpu.vector_store %arg7[%c8, %c0_4], %4 {strides = array<i32>} : memref<24x128xf32, #tpu.memory_space<vmem>>, vector<8x128xf32>,
    %6 = vector.extract_strided_slice %1 {offsets = [0, 2], sizes = [8, 128], strides = [1, 1]} : vector<8x256xf32> to vector<8x128xf32>
    %c16 = arith.constant 16 : index
    %c0_5 = arith.constant 0 : index
    %7 = vector.load %arg7[%c16, %c0_5] : memref<24x128xf32, #tpu.memory_space<vmem>>, vector<8x128xf32>
    tpu.vector_store %arg7[%c16, %c0_5], %6 {strides = array<i32>} : memref<24x128xf32, #tpu.memory_space<vmem>>, vector<8x128xf32>,
    %c0_6 = arith.constant 0 : index
    %c0_7 = arith.constant 0 : index
    %8 = vector.load %arg1[%c0_6, %c0_7] : memref<8x24xf32, #tpu.memory_space<vmem>>, vector<8x24xf32>
    %c0_8 = arith.constant 0 : index
    %c0_9 = arith.constant 0 : index
    %9 = vector.load %arg7[%c0_8, %c0_9] : memref<24x128xf32, #tpu.memory_space<vmem>>, vector<24x128xf32>
    %cst = arith.constant dense<0.000000e+00> : vector<8x128xf32>
    %10 = tpu.matmul %8, %9, %cst {dimension_numbers = #tpu.dot_dimension_numbers<[1], [0], [0], [1], [0, 0, 1, 1], [], []>} : vector<8x24xf32>, vector<24x128xf32>, vector<8x128xf32> -> vector<8x128xf32>
    %c0_10 = arith.constant 0 : index
    %c0_11 = arith.constant 0 : index
    %11 = vector.load %arg2[%c0_10, %c0_11] : memref<8x1xf32, #tpu.memory_space<vmem>>, vector<8x1xf32>
    %12 = vector.broadcast %11 : vector<8x1xf32> to vector<8x128xf32>
    %13 = arith.addf %10, %12 : vector<8x128xf32>
    %14 = tpu.iota {dimensions = array<i32: 1>} : vector<1x128xi32>
    %c16_i32 = arith.constant 16 : i32
    %15 = vector.broadcast %c16_i32 : i32 to vector<1x128xi32>
    %16 = arith.cmpi slt, %14, %15 : vector<1x128xi32>
    %17 = arith.extui %16 : vector<1x128xi1> to vector<1x128xi32>
    %18 = arith.sitofp %17 : vector<1x128xi32> to vector<1x128xf32>
    %cst_12 = arith.constant dense<0.000000e+00> : vector<128xf32>
    %19 = vector.multi_reduction <add>, %13, %cst_12 [0] : vector<8x128xf32> to vector<128xf32>
    %20 = vector.shape_cast %19 : vector<128xf32> to vector<1x128xf32>
    %21 = arith.mulf %20, %18 : vector<1x128xf32>
    %22 = vector.shape_cast %21 : vector<1x128xf32> to vector<1x1x128xf32>
    %cst_13 = arith.constant dense<0.000000e+00> : vector<1xf32>
    %23 = vector.multi_reduction <add>, %22, %cst_13 [1, 2] : vector<1x1x128xf32> to vector<1xf32>
    %24 = vector.shape_cast %23 : vector<1xf32> to vector<1x1x1xf32>
    %25 = vector.extract %24[0, 0, 0] : f32 from vector<1x1x1xf32>
    %cst_14 = arith.constant 9.600000e+01 : f32
    %26 = arith.divf %25, %cst_14 : f32
    %27 = vector.broadcast %26 : f32 to vector<8x128xf32>
    %28 = arith.subf %13, %27 : vector<8x128xf32>
    %29 = arith.mulf %28, %28 : vector<8x128xf32>
    %cst_15 = arith.constant dense<0.000000e+00> : vector<128xf32>
    %30 = vector.multi_reduction <add>, %29, %cst_15 [0] : vector<8x128xf32> to vector<128xf32>
    %31 = vector.shape_cast %30 : vector<128xf32> to vector<1x128xf32>
    %32 = arith.mulf %26, %26 : f32
    %cst_16 = arith.constant 2.000000e+00 : f32
    %33 = arith.mulf %cst_16, %32 : f32
    %34 = vector.broadcast %33 : f32 to vector<1x128xf32>
    %35 = arith.subf %31, %34 : vector<1x128xf32>
    %36 = arith.mulf %35, %18 : vector<1x128xf32>
    %37 = vector.shape_cast %36 : vector<1x128xf32> to vector<1x1x128xf32>
    %cst_17 = arith.constant dense<0.000000e+00> : vector<1xf32>
    %38 = vector.multi_reduction <add>, %37, %cst_17 [1, 2] : vector<1x1x128xf32> to vector<1xf32>
    %39 = vector.shape_cast %38 : vector<1xf32> to vector<1x1x1xf32>
    %40 = vector.extract %39[0, 0, 0] : f32 from vector<1x1x1xf32>
    %cst_18 = arith.constant 9.600000e+01 : f32
    %41 = arith.divf %40, %cst_18 : f32
    %cst_19 = arith.constant 0.000000e+00 : f32
    %42 = arith.maximumf %41, %cst_19 : f32
    %cst_20 = arith.constant 9.99999993E-9 : f32
    %43 = arith.addf %42, %cst_20 : f32
    %44 = math.rsqrt %43 : f32
    %c0_21 = arith.constant 0 : index
    %c0_22 = arith.constant 0 : index
    %45 = vector.load %arg3[%c0_21, %c0_22] : memref<8x1xf32, #tpu.memory_space<vmem>>, vector<8x1xf32>
    %46 = vector.broadcast %44 : f32 to vector<8x1xf32>
    %47 = arith.mulf %45, %46 : vector<8x1xf32>
    %c0_23 = arith.constant 0 : index
    %c0_24 = arith.constant 0 : index
    %48 = vector.load %arg4[%c0_23, %c0_24] : memref<8x1xf32, #tpu.memory_space<vmem>>, vector<8x1xf32>
    %49 = vector.broadcast %26 : f32 to vector<8x1xf32>
    %50 = arith.mulf %47, %49 : vector<8x1xf32>
    %51 = arith.subf %48, %50 : vector<8x1xf32>
    %52 = vector.broadcast %47 : vector<8x1xf32> to vector<8x128xf32>
    %53 = arith.mulf %13, %52 : vector<8x128xf32>
    %54 = vector.broadcast %51 : vector<8x1xf32> to vector<8x128xf32>
    %55 = arith.addf %53, %54 : vector<8x128xf32>
    %c0_25 = arith.constant 0 : index
    %c0_26 = arith.constant 0 : index
    %c0_27 = arith.constant 0 : index
    %56 = vector.load %arg6[%c0_25, %c0_26, %c0_27] : memref<1x8x128xf32, #tpu.memory_space<vmem>>, vector<1x8x128xf32>
    %57 = vector.shape_cast %56 : vector<1x8x128xf32> to vector<8x128xf32>
    %58 = vector.shape_cast %55 : vector<8x128xf32> to vector<1x8x128xf32>
    tpu.vector_store %arg6[%c0_25, %c0_26, %c0_27], %58 {strides = array<i32>} : memref<1x8x128xf32, #tpu.memory_space<vmem>>, vector<1x8x128xf32>,
    return
  }
  func.func @transform_0(%arg0: i32) -> (i32, i32) {
    %c0_i32 = arith.constant 0 : i32
    %c0_i32_0 = arith.constant 0 : i32
    %c0_i32_1 = arith.constant 0 : i32
    return %c0_i32, %c0_i32_0 : i32, i32
  }
  func.func @transform_1(%arg0: i32) -> (i32, i32) {
    %c0_i32 = arith.constant 0 : i32
    %c0_i32_0 = arith.constant 0 : i32
    %c0_i32_1 = arith.constant 0 : i32
    return %c0_i32, %c0_i32_0 : i32, i32
  }
  func.func @transform_2(%arg0: i32) -> (i32, i32) {
    %c0_i32 = arith.constant 0 : i32
    %c0_i32_0 = arith.constant 0 : i32
    %c0_i32_1 = arith.constant 0 : i32
    return %c0_i32, %c0_i32_0 : i32, i32
  }
  func.func @transform_3(%arg0: i32) -> (i32, i32) {
    %c0_i32 = arith.constant 0 : i32
    %c0_i32_0 = arith.constant 0 : i32
    %c0_i32_1 = arith.constant 0 : i32
    return %c0_i32, %c0_i32_0 : i32, i32
  }
  func.func @transform_4(%arg0: i32) -> (i32, i32, i32) {
    %c0_i32 = arith.constant 0 : i32
    %c0_i32_0 = arith.constant 0 : i32
    %c0_i32_1 = arith.constant 0 : i32
    return %arg0, %c0_i32, %c0_i32_0 : i32, i32, i32
  }
  func.func @transform_5(%arg0: i32) -> (i32, i32, i32) {
    %c0_i32 = arith.constant 0 : i32
    %c0_i32_0 = arith.constant 0 : i32
    %c0_i32_1 = arith.constant 0 : i32
    return %arg0, %c0_i32, %c0_i32_0 : i32, i32, i32
  }
}

</mosaic_0001>

<bundles_post_ra>
// kernel: tpu_custom_call.1
= control target key start
LH: loop header
LB: loop body
LE: loop exit
PB: predicated region body
PF: predicated region fallthrough
CT: control target
= control target key end

     0   :  { %10 = vsyncpa [#allocation4], 0  ;;  %s796_s0 = inlined_call_operand.vmem [shape: f32[8,24], index: 0, kind: input, shape index: {}]   ;;  %s797_s1 = inlined_call_operand.vmem [shape: f32[8,1], index: 1, kind: input, shape index: {}]   ;;  %s798_s2 = inlined_call_operand.vmem [shape: f32[8,1], index: 2, kind: input, shape index: {}]   ;;  %s799_s3 = inlined_call_operand.vmem [shape: f32[8,1], index: 3, kind: input, shape index: {}]   ;;  %s800_s4 = inlined_call_operand.vmem [shape: f32[2,8,256], index: 4, kind: input, shape index: {}]   ;;  %s801_s5 = inlined_call_operand.hbm [shape: f32[2,8,128], index: 5, kind: output, shape index: {}]  }
   0x1   :  { %12 = vsyncpa [#allocation4 + $0x1], 0  ;;  %s671_s18 = smov 0   ;;  %s673_s19 = smov 0  }
   0x2   :  { %s675_s20 = smov 0   ;;  %s677_s21 = smov 0  }
   0x3 LB: > { %s692_s22 = sadd.s32 4294967295, %s631_s21   ;;  %s478_s23 = sadd.s32 4294967294, %s631_s21   ;;  %s631_s21 = sphi %s677_s21, %s807_s21   ;;  %s627_s20 = sphi %s675_s20, %s806_s20   ;;  %s623_s19 = sphi %s673_s19, %s805_s19   ;;  %s619_s18 = sphi %s671_s18, %s804_s18  }
   0x4   : > { %s696_s24 = sadd.s32 1, %s631_s21   ;;  %s135_s25 = sadd.s32 1, %s627_s20 }
   0x5   : > { %s132_s26 = ssub.s32 %s631_s21, %s696_s24  ;;  %p145_p0 = scmp.ne.s32.totalorder %s627_s20, %s623_s19 }
   0x6   : > { %p133_p1 = scmp.eq.s32.totalorder %s132_s26, 0  ;;  %p146_p2 = scmp.eq.s32.totalorder %s692_s22, 1 }
   0x7   : > { %p151_p3 = scmp.ne.s32.totalorder %s623_s19, %s619_s18  ;;  %p152_p4 = scmp.eq.s32.totalorder %s478_s23, 1 }
   0x8   : > { %s707_s27 = scalar_select %p133_p1, %s627_s20, %s135_s25  }
   0x9   : > { %p709_p5 = por %p146_p2, %p145_p0  ;;  %p713_p6 = por %p152_p4, %p151_p3 }
   0xa   : > { %p481_p7 = scmp.ge.s32.totalorder %s631_s21, 1  ;;  %p190_p8 = scmp.lt.s32.totalorder %s631_s21, 3 }
   0xc   : > { %p191_p9 = pnand %p481_p7, %p190_p8 }
   0xd   : > { %p218_p10 = scmp.lt.s32.totalorder (!%p191_p9), %s692_s22, 1  ;;  %v633_v0 = vmov (!%p191_p9), 0.0|0.0   ;;  %vm634_vm0 = vmmov (!%p191_p9), 0   ;;  %v635_v1 = vmov (!%p191_p9), 0.0   ;;  %s636_s10 = smov (!%p191_p9), 126   ;;  %v637_v5 = vmov (!%p191_p9), 0  }
   0xe   : > { %194 = sbr.rel (%p191_p9) target bundleno = 1032 (0x408), region = 40  ;;  %505 = vmatprep.subr.bf16.mxu0 (!%p191_p9), %v633_v0  ;;  %502 = vmatprep.mubr.msk.f32.mxu0 (!%p191_p9), %vm634_vm0, %v635_v1  ;;  %v248_v6 = vld [vmem:[%s797_s1] sm:$0xff] (!%p191_p9)  ;;  %s638_s13 = smov (!%p191_p9), 127   ;;  %vm232_vm1 = vcmask (!%p191_p9), 1039360   ;;  %vm240_vm2 = vcmask (!%p191_p9), 1031168   ;;  %vm254_vm3 = vcmask (!%p191_p9), 195584   ;;  %v328_v20 = vlaneseq (!%p191_p9) }
   0xf   : > { %566 = vset.pattern.permute.xlu0 (!%p191_p9), %v637_v5  ;;  %565 = vset.pattern.permute.xlu1 (!%p191_p9), %v637_v5  ;;  %v244_v15 = vld [vmem:[%s796_s0] sm:$0xff] (!%p191_p9)  ;;  %vm340_vm5 = vcmask (!%p191_p9), 1040384   ;;  %s215_s14 = sand.u32 (!%p191_p9), 1, %s623_s19  }
  0x10   : > { %v329_v22 = vand.u32 (!%p191_p9), 127, %v328_v20  ;;  %v386_v60 = vld [vmem:[%s798_s2] sm:$0xff] (!%p191_p9)  ;;  %s482_s15 = sshll.u32 (!%p191_p9), %s215_s14, 3 }
  0x11   : > { %v389_v63 = vld [vmem:[%s799_s3] sm:$0xff] (!%p191_p9) }
  0x12   : > { %vm330_vm4 = vcmp.lt.s32.totalorder (!%p191_p9), %v329_v22, 16 }
  0x13   : > { %v486_v27 = vsel (!%p191_p9), %vm330_vm4, 1.0, %v635_v1 }
  0x15   : > { %s219_s30 = scalar_select %p218_p10, %s692_s22, 1 }
  0x17   : > { %s491_s6 = sshll.u32 %s219_s30, 4 }
  0x18   : > { %s222_s9 = scalar_lea.vmem %s800_s4, %s491_s6  ;;  %s639_s6 = smov 0.0  }
  0x19   : > { %v223_v2 = vld [vmem:[%s222_s9] sm:$0xff]  ;;  %v224_v3 = vld [vmem:[%s222_s9 + $0x8] sm:$0xff] }
  0x1a   : > { %v560_v4 = vpack.i.bf16 %v224_v3, %v223_v2  ;;  %238 = vrot.lane.b32.xlu1 %v224_v3, %s636_s10 }
  0x1c   : > { %561 = vrot.lane.b32.xlu0 %v560_v4, %s638_s13 }
  0x1e   : > { %251 = vperm.xlu1 %565, %v248_v6  }
  0x20   : > { %236 = vrot.lane.b32.xlu0 %v223_v2, %s636_s10 }
  0x8c   : > { %v239_v12 = vpop.permute.xlu1 %238 }
  0x8e   : > { %v562_v7 = vpop.permute.xlu0 %561 }
  0x8f   : > { %v564_v8 = vunpack.i.h.bf16 %v562_v7  ;;  %v563_v9 = vunpack.i.l.bf16 %v562_v7 }
  0x91   : > { %v233_v10 = vsel %vm232_vm1, %v563_v9, %v564_v8 }
  0x92   : > { %v506_v11 = vpack.c.bf16 %v233_v10, %v223_v2  ;;  %v237_v13 = vpop.permute.xlu0 %236 }
  0x93   : > { %v241_v14 = vsel %vm240_vm2, %v237_v13, %v239_v12 }
  0x94   : > { %507 = vmatpush3.bf16.msra.mxu0 %v506_v11 }
  0x95   : > { %500 = vmatprep.subr.mxu0 %v635_v1 }
  0x98   : > { %501 = vmatpush3.msra.mxu0 %v241_v14 }
  0x99   : > { %503 = vmatmul.mubr.msk.f32.vlgmr.msra.gmra.mrb[0].mxu0 %vm254_vm3, %v244_v15 }
  0x9d   : > { %v252_v16 = vpop.permute.xlu1 %251 }
 0x16c   : > { %v324_v17 = vpop.f32.mrb[0].mxu0 }
 0x16d   : > { %v730_v18 = vadd.f32 %v324_v17, %v252_v16  ;;  %v504_v19 = vpop.f32.mrb[1].mxu0 }
 0x16f   : > { %v333_v21 = vrot.slane %v730_v18, 4 }
 0x171   : > { %v334_v23 = vadd.f32 %v333_v21, %v730_v18 }
 0x173   : > { %v335_v24 = vrot.slane %v334_v23, 2 }
 0x175   : > { %v336_v25 = vadd.f32 %v335_v24, %v334_v23 }
 0x177   : > { %v337_v26 = vrot.slane %v336_v25, 1 }
 0x179   : > { %v338_v28 = vadd.f32 %v337_v26, %v336_v25 }
 0x17b   : > { %v339_v29 = vmul.f32 %v486_v27, %v338_v28 }
 0x17d   : > { %v341_v30 = vsel %vm340_vm5, %v339_v29, 0.0 }
 0x17e   : > { %342 = vadd.xlane.f32.xlu0 %v341_v30 }
 0x20b   : > { %v343_v31 = vpop.xlane.xlu0 %342 }
 0x20c   : > { %v344_v32 = vrot.slane %v343_v31, 4 }
 0x20e   : > { %v345_v33 = vadd.f32 %v344_v32, %v343_v31 }
 0x210   : > { %v346_v34 = vrot.slane %v345_v33, 2 }
 0x212   : > { %v347_v35 = vadd.f32 %v346_v34, %v345_v33 }
 0x214   : > { %v348_v36 = vrot.slane %v347_v35, 1 }
 0x216   : > { %v349_v37 = vadd.f32 %v348_v36, %v347_v35 }
 0x218   : > { %508 = vpush %v349_v37 }
 0x249   : > { %s509_s16 = spop %508 }
 0x24a   : > { %s735_s17 = smul.f32 0.010416667, %s509_s16  ;;  %s488_s16 = sshll.u32 %s692_s22, 7 }
 0x24b   : > { %s640_s22 = smov [#allocation3]  }
 0x24c   : > { %v354_v38 = vstv %s735_s17  ;;  %s363_s23 = smul.f32 %s735_s17, %s735_s17  ;;  %s217_s17 = scalar_lea.vmem [#allocation3], %s482_s15 }
 0x24d   : > { %v355_v39 = vsub.f32 %v730_v18, %v354_v38 }
 0x24e   : > { %s364_s25 = smul.f32 2.0, %s363_s23  ;;  %s419_s23 = sshll.u32 %s217_s17, 4  ;;  %s756_s23 = int_to_ptr.vmem [resolvable:$true] %s419_s23 }
 0x24f   : > { %v356_v40 = vmul.f32 %v355_v39, %v355_v39 }
 0x250   : > { %v365_v47 = vstv %s364_s25 }
 0x251   : > { %v357_v41 = vrot.slane %v356_v40, 4 }
 0x253   : > { %v358_v42 = vadd.f32 %v357_v41, %v356_v40 }
 0x255   : > { %v359_v43 = vrot.slane %v358_v42, 2 }
 0x257   : > { %v360_v44 = vadd.f32 %v359_v43, %v358_v42 }
 0x259   : > { %v361_v45 = vrot.slane %v360_v44, 1 }
 0x25b   : > { %v362_v46 = vadd.f32 %v361_v45, %v360_v44 }
 0x25d   : > { %v366_v48 = vsub.f32 %v362_v46, %v365_v47 }
 0x25f   : > { %v367_v49 = vmul.f32 %v486_v27, %v366_v48 }
 0x261   : > { %v368_v50 = vsel %vm340_vm5, %v367_v49, 0.0 }
 0x262   : > { %369 = vadd.xlane.f32.xlu1 %v368_v50 }
 0x2ef   : > { %v370_v51 = vpop.xlane.xlu1 %369 }
 0x2f0   : > { %v371_v52 = vrot.slane %v370_v51, 4 }
 0x2f2   : > { %v372_v53 = vadd.f32 %v371_v52, %v370_v51 }
 0x2f4   : > { %v373_v54 = vrot.slane %v372_v53, 2 }
 0x2f6   : > { %v374_v55 = vadd.f32 %v373_v54, %v372_v53 }
 0x2f8   : > { %v375_v56 = vrot.slane %v374_v55, 1 }
 0x2fa   : > { %v376_v57 = vadd.f32 %v375_v56, %v374_v55 }
 0x2fc   : > { %510 = vpush %v376_v57 }
 0x32d   : > { %s511_s26 = spop %510 }
 0x32e   : > { %s380_s30 = smul.f32 0.010416667, %s511_s26 }
 0x330   : > { %s381_s7 = smax.f32 %s639_s6, %s380_s30  ;;  %s754_s30 = scalar_lea.hbm %s801_s5, %s488_s16 }
 0x331   : > { %s382_s8 = sadd.f32 1e-08, %s381_s7  ;;  %s406_s6 = scalar_lea.sflag [#allocation4], %s215_s14 }
 0x332   : > { %s569_s7 = scalar_lea.vmem %s756_s23, 128 }
 0x333   : > { %v383_v58 = vstv %s382_s8  ;;  %p570_p11 = scmp.ne.s32.totalorder %s756_s23, %s569_s7  ;;  %s573_s8 = sshll.u32 %s640_s22, 4  ;;  %s574_s8 = int_to_ptr.vmem [resolvable:$false] %s573_s8 }
 0x334   : > { %567 = vrsqrt.f32 %v383_v58  ;;  %s575_s9 = scalar_lea.vmem %s574_s8, 256  ;;  %p576_p0 = scmp.lt.s32.totalorder %s756_s23, %s574_s8 }
 0x335   : > { %p571_p12 = pnand %p570_p11, %p709_p5  ;;  %p577_p1 = scmp.lt.s32.totalorder %s575_s9, %s569_s7 }
 0x337   : > { %p572_p13 = pneg %p571_p12  ;;  %p578_p2 = por %p577_p1, %p576_p0 }
 0x339   : > { %p579_p3 = pnand %p578_p2, %p572_p13 }
 0x33e   : > { %v568_v59 = vpop.eup %567 }
 0x33f   : > { %512 = vpush %v568_v59 }
 0x370   : > { %s513_s11 = spop %512 }
 0x371   : > { %v387_v61 = vstv %s513_s11 }
 0x372   : > { %v388_v62 = vmul.f32 %v387_v61, %v386_v60 }
 0x374   : > { %v390_v0 = vmul.f32 %v388_v62, %v354_v38  ;;  %394 = vperm.xlu0 %566, %v388_v62  }
 0x376   : > { %v391_v1 = vsub.f32 %v389_v63, %v390_v0 }
 0x378   : > { %400 = vperm.xlu1 %565, %v391_v1  }
 0x3f3   : > { %v395_v2 = vpop.permute.xlu0 %394 }
 0x3f4   : > { %v397_v3 = vmul.f32 %v395_v2, %v730_v18 }
 0x3f7   : > { %v401_v4 = vpop.permute.xlu1 %400 }
 0x3f8   : > { %v403_v5 = vadd.f32 %v401_v4, %v397_v3 }
 0x3fa   : > { %404 = vst [vmem:[%s217_s17] sm:$0xff] %v403_v5 }
 0x3fb   : > { %582 = shalt.err (!%p579_p3)
}
 0x3fc   : > { %s583_s10 = scalar_lea.hbm %s754_s30, 128  ;;  %s587_s13 = scalar_lea.hbm %s801_s5, 256 }
 0x3fd   : > { %p584_p4 = scmp.ne.s32.totalorder %s754_s30, %s583_s10  ;;  %p588_p9 = scmp.lt.u32.totalorder %s754_s30, %s801_s5 }
 0x3fe   : > { %p589_p10 = scmp.lt.u32.totalorder %s587_s13, %s583_s10  ;;  %p591_p12 = scmp.lt.u32.totalorder %s583_s10, %s754_s30 }
 0x3ff   : > { %p585_p7 = pnand %p584_p4, %p709_p5 }
 0x400   : > { %p590_p11 = por %p589_p10, %p588_p9 }
 0x401   : > { %p586_p8 = pneg %p585_p7 }
 0x402   : > { %p592_p13 = por %p591_p12, %p590_p11 }
 0x404   : > { %p593_p0 = pnand %p592_p13, %p586_p8 }
 0x406   : > { %596 = shalt.err (!%p593_p0)
}
 0x407   : > { %514 = dma.vmem_to_hbm [thread:$0]  (%p709_p5), %s756_s23, 128, %s754_s30, %s406_s6  }
 0x408 PF: > { %p520_p1 = scmp.ge.s32.totalorder %s631_s21, 2  ;;  %s431_s16 = sand.u32 1, %s619_s18  }
 0x409   : > { %s432_s17 = scalar_lea.sflag [#allocation4], %s431_s16 }
 0x40a   : > { %p517_p2 = pnand %p520_p1, %p713_p6 }
 0x40c   : > { %614 = dma.done.wait (!%p517_p2), %s432_s17, 128  }
 0x40d   : > { %616 = vsyncadd (!%p517_p2), %s432_s17, 4294967168  ;;  %p15_p3 = scmp.ge.s32.totalorder %s696_s24, 4   ;;  %s804_s18 = smov %s623_s19 }
 0x40e   : > { %s805_s19 = smov %s627_s20  ;;  %s806_s20 = smov %s707_s27 }
 0x40f   : > { %s807_s21 = smov %s696_s24  ;;  %17 = sbr.rel (!%p15_p3) target bundleno = 3 (0x3), region = 75 }
 0x416   :  { %437 = vsyncpa [#allocation4], 1 }
 0x417   :  { %439 = vsyncpa [#allocation4 + $0x1], 1 }

</bundles_post_ra>
